<compile_context>
chip_gen: v5e
topology: v5e:2x2
jax: 0.10.0
libtpu: 0.0.40
codegen_flags: <defaults>
</compile_context>

<pallas_src>
import functools

import jax
import jax.numpy as jnp
from jax.experimental import pallas as pl
from jax.experimental.pallas import tpu as pltpu


def _round_up(x, m):
    return ((x + m - 1) // m) * m


def _tpu_generation():
    """Best-effort TPU generation detection ('v5' / 'v6' / 'v7' / None)."""
    try:
        kind = jax.devices()[0].device_kind.lower()
    except Exception:  # pragma: no cover - defensive
        return None
    for g in ("v7", "v6", "v5"):
        if g in kind:
            return g
    return None


def _clve_head_kernel(x_ref, wp_ref, wf_ref, params_ref, o_ref, *, eps):
    # x_ref:      (tile_m, K)        input row tile (native dtype)
    # wp_ref:     (K, out_dim)       projection weight (transposed vs torch)
    # wf_ref:     (out_dim, out_dim) fc weight (transposed vs torch)
    # params_ref: (4, out_dim) f32   rows: [bp, bf, gamma, beta]
    bp = params_ref[0:1, :]
    bf = params_ref[1:2, :]
    gamma = params_ref[2:3, :]
    beta = params_ref[3:4, :]

    # projection = x @ Wp + bp  -- native-dtype MXU operands, f32 accumulation.
    projected = jnp.dot(x_ref[...], wp_ref[...],
                        preferred_element_type=jnp.float32) + bp

    # QuickGELU: p * sigmoid(1.702 * p)   (VPU / EUP, f32)
    h = projected * jax.nn.sigmoid(1.702 * projected)

    # fc = h @ Wf + bf  -- cast activations back to weight dtype for the MXU.
    h = jnp.dot(h.astype(wf_ref.dtype), wf_ref[...],
                preferred_element_type=jnp.float32) + bf

    # TODO(synk): dropout is identity at inference time (no RNG mask applied).

    # residual
    h = h + projected

    # LayerNorm over last dim (biased variance, eps inside rsqrt - matches torch)
    mean = jnp.mean(h, axis=-1, keepdims=True)
    centered = h - mean
    var = jnp.mean(centered * centered, axis=-1, keepdims=True)
    out = centered * jax.lax.rsqrt(var + eps) * gamma + beta

    o_ref[...] = out.astype(o_ref.dtype)


def clve_projection_head(x, wp, bp, wf, bf, gamma, beta, *,
                         tile_m=None, eps=1e-5):
    """x: (B, input_dim); wp: (input_dim, out); wf: (out, out); 1-D params (out,)."""
    B, input_dim = x.shape
    out_dim = wp.shape[1]
    out_dtype = x.dtype

    x_item = x.dtype.itemsize
    w_item = wp.dtype.itemsize
    o_item = out_dtype.itemsize

    gen = _tpu_generation()
    # v7x has 64 MiB/TC -> keep headroom; v5e/v6e have 128 MiB -> allow more.
    vmem_cap = (96 << 20) if gen in ("v5", "v6") else (48 << 20)

    # tile_m: default 256 to fill the 256-wide MXU on v6e/v7x; clamp for tiny
    # batches (sublane granularity is 8).
    if tile_m is None:
        tile_m = 256
    tile_m = max(8, min(_round_up(tile_m, 8), _round_up(B, 8)))

    # On v7x the "parallel" batch axis is what gets sharded across the 2 TCs:
    # keep at least 2 grid steps when the batch is big enough to split.
    if gen == "v7" and B >= 16 and -(-B // tile_m) < 2:
        tile_m = _round_up(-(-B // 2), 8)

    # VMEM need: double-buffered x/out tiles, single-buffered resident weights
    # (Buffered(1)), plus the compiler-managed f32 intermediates
    # (projected, h, centered, out ~ 4 x tile_m x out_dim x 4B).
    weight_bytes = ((input_dim * out_dim + out_dim * out_dim) * w_item
                    + 8 * out_dim * 4)   # params slab padded to 8 sublanes

    def _need(tm):
        return (2 * tm * input_dim * x_item
                + weight_bytes
                + 2 * tm * out_dim * o_item
                + 4 * tm * out_dim * 4)

    while _need(tile_m) > int(vmem_cap * 0.75) and tile_m > 8:
        tile_m = max(8, _round_up(tile_m // 2, 8))

    grid_m = -(-B // tile_m)   # pl.cdiv
    vmem_limit = max(16 << 20, min(int(_need(tile_m) * 1.5) + (4 << 20), vmem_cap))

    # Pack bias / layernorm params into one (4, out_dim) f32 slab.
    params = jnp.stack([bp, bf, gamma, beta], axis=0).astype(jnp.float32)

    cost = pl.CostEstimate(
        flops=2 * B * (input_dim + out_dim) * out_dim,
        transcendentals=B * out_dim + B,          # sigmoid + per-row rsqrt
        bytes_accessed=(B * input_dim * x_item
                        + input_dim * out_dim * w_item
                        + out_dim * out_dim * w_item
                        + 4 * out_dim * 4
                        + B * out_dim * o_item),
    )

    kernel = functools.partial(_clve_head_kernel, eps=eps)

    def _call(weight_pipeline_mode):
        extra = ({} if weight_pipeline_mode is None
                 else {"pipeline_mode": weight_pipeline_mode})
        in_specs = [
            pl.BlockSpec((tile_m, input_dim), lambda i: (i, 0)),             # x rows
            pl.BlockSpec((input_dim, out_dim), lambda i: (0, 0), **extra),   # Wp
            pl.BlockSpec((out_dim, out_dim), lambda i: (0, 0), **extra),     # Wf
            pl.BlockSpec((4, out_dim), lambda i: (0, 0), **extra),           # params
        ]
        return pl.pallas_call(
            kernel,
            out_shape=jax.ShapeDtypeStruct((B, out_dim), out_dtype),
            grid_spec=pltpu.PrefetchScalarGridSpec(
                num_scalar_prefetch=0,
                grid=(grid_m,),
                in_specs=in_specs,
                out_specs=pl.BlockSpec((tile_m, out_dim), lambda i: (i, 0)),
            ),
            compiler_params=pltpu.CompilerParams(
                dimension_semantics=("parallel",),
                vmem_limit_bytes=vmem_limit),
            cost_estimate=cost,
        )(x, wp, wf, params)

    try:
        # Constant index maps -> single-buffered resident weights.
        return _call(pl.Buffered(1))
    except Exception:
        # Fallback in case this Pallas version rejects buffer_count=1.
        return _call(None)


def _reference(x, wp, bp, wf, bf, gamma, beta, eps=1e-5):
    projected = x @ wp + bp
    h = projected * jax.nn.sigmoid(1.702 * projected)
    h = h @ wf + bf
    h = h + projected
    mean = jnp.mean(h, axis=-1, keepdims=True)
    var = jnp.mean((h - mean) ** 2, axis=-1, keepdims=True)
    return (h - mean) * jax.lax.rsqrt(var + eps) * gamma + beta


if __name__ == "__main__":
    key = jax.random.PRNGKey(0)
    k_x, k_wp, k_bp, k_wf, k_bf = jax.random.split(key, 5)

    batch = 8
    input_dim = 64
    output_dim = 128

    x = jax.random.normal(k_x, (batch, input_dim), dtype=jnp.float32)

    # Deterministic synthetic parameters (nn.Linear stores (out, in); we keep
    # them transposed as (in, out) so the kernel does x @ W).
    wp = jax.random.normal(k_wp, (input_dim, output_dim), jnp.float32) * 0.05
    bp = jax.random.normal(k_bp, (output_dim,), jnp.float32) * 0.05
    wf = jax.random.normal(k_wf, (output_dim, output_dim), jnp.float32) * 0.05
    bf = jax.random.normal(k_bf, (output_dim,), jnp.float32) * 0.05
    gamma = jnp.ones((output_dim,), jnp.float32)   # LayerNorm default init
    beta = jnp.zeros((output_dim,), jnp.float32)

    out = clve_projection_head(x, wp, bp, wf, bf, gamma, beta)
    out = jax.block_until_ready(out)

    ref = _reference(x, wp, bp, wf, bf, gamma, beta)
    assert out.shape == (batch, output_dim)
    assert jnp.allclose(out, ref, atol=1e-4, rtol=1e-4), "mismatch vs reference"

    print("KERNEL_OK")
</pallas_src>

<mosaic_0001>
module attributes {stable_mosaic.version = 11 : i64} {
  func.func @_clve_head_kernel(%arg0: i32, %arg1: memref<8x64xf32, #tpu.memory_space<vmem>>, %arg2: memref<64x128xf32, #tpu.memory_space<vmem>>, %arg3: memref<128x128xf32, #tpu.memory_space<vmem>>, %arg4: memref<4x128xf32, #tpu.memory_space<vmem>>, %arg5: memref<8x128xf32, #tpu.memory_space<vmem>>) attributes {dimension_semantics = [#tpu.dimension_semantics<parallel>], iteration_bounds = array<i64: 1>, scalar_prefetch = 0 : i64, scratch_operands = 0 : i64, tpu.core_type = #tpu.core_type<tc>, window_params = [{transform_indices = @transform_0, window_bounds = array<i64: 8, 64>}, {pipeline_mode = #tpu.pipeline_mode<synchronous>, transform_indices = @transform_1, window_bounds = array<i64: 64, 128>}, {pipeline_mode = #tpu.pipeline_mode<synchronous>, transform_indices = @transform_2, window_bounds = array<i64: 128, 128>}, {pipeline_mode = #tpu.pipeline_mode<synchronous>, transform_indices = @transform_3, window_bounds = array<i64: 4, 128>}, {transform_indices = @transform_4, window_bounds = array<i64: 8, 128>}]} {
    %c0 = arith.constant 0 : index
    %c0_0 = arith.constant 0 : index
    %0 = vector.load %arg4[%c0, %c0_0] : memref<4x128xf32, #tpu.memory_space<vmem>>, vector<1x128xf32>
    %c1 = arith.constant 1 : index
    %c0_1 = arith.constant 0 : index
    %1 = vector.load %arg4[%c1, %c0_1] : memref<4x128xf32, #tpu.memory_space<vmem>>, vector<1x128xf32>
    %c2 = arith.constant 2 : index
    %c0_2 = arith.constant 0 : index
    %2 = vector.load %arg4[%c2, %c0_2] : memref<4x128xf32, #tpu.memory_space<vmem>>, vector<1x128xf32>
    %c3 = arith.constant 3 : index
    %c0_3 = arith.constant 0 : index
    %3 = vector.load %arg4[%c3, %c0_3] : memref<4x128xf32, #tpu.memory_space<vmem>>, vector<1x128xf32>
    %c0_4 = arith.constant 0 : index
    %c0_5 = arith.constant 0 : index
    %4 = vector.load %arg1[%c0_4, %c0_5] : memref<8x64xf32, #tpu.memory_space<vmem>>, vector<8x64xf32>
    %c0_6 = arith.constant 0 : index
    %c0_7 = arith.constant 0 : index
    %5 = vector.load %arg2[%c0_6, %c0_7] : memref<64x128xf32, #tpu.memory_space<vmem>>, vector<64x128xf32>
    %cst = arith.constant dense<0.000000e+00> : vector<8x128xf32>
    %6 = tpu.matmul %4, %5, %cst {dimension_numbers = #tpu.dot_dimension_numbers<[1], [0], [0], [1], [0, 0, 1, 1], [], []>} : vector<8x64xf32>, vector<64x128xf32>, vector<8x128xf32> -> vector<8x128xf32>
    %7 = vector.broadcast %0 : vector<1x128xf32> to vector<8x128xf32>
    %8 = arith.addf %6, %7 : vector<8x128xf32>
    %cst_8 = arith.constant 1.702000e+00 : f32
    %9 = vector.broadcast %cst_8 : f32 to vector<8x128xf32>
    %10 = arith.mulf %9, %8 : vector<8x128xf32>
    %11 = arith.negf %10 : vector<8x128xf32>
    %12 = math.exp %11 : vector<8x128xf32>
    %cst_9 = arith.constant 1.000000e+00 : f32
    %13 = vector.broadcast %cst_9 : f32 to vector<8x128xf32>
    %14 = arith.addf %13, %12 : vector<8x128xf32>
    %15 = arith.divf %13, %14 : vector<8x128xf32>
    %16 = arith.mulf %8, %15 : vector<8x128xf32>
    %c0_10 = arith.constant 0 : index
    %c0_11 = arith.constant 0 : index
    %17 = vector.load %arg3[%c0_10, %c0_11] : memref<128x128xf32, #tpu.memory_space<vmem>>, vector<128x128xf32>
    %cst_12 = arith.constant dense<0.000000e+00> : vector<8x128xf32>
    %18 = tpu.matmul %16, %17, %cst_12 {dimension_numbers = #tpu.dot_dimension_numbers<[1], [0], [0], [1], [0, 0, 1, 1], [], []>} : vector<8x128xf32>, vector<128x128xf32>, vector<8x128xf32> -> vector<8x128xf32>
    %19 = vector.broadcast %1 : vector<1x128xf32> to vector<8x128xf32>
    %20 = arith.addf %18, %19 : vector<8x128xf32>
    %21 = arith.addf %20, %8 : vector<8x128xf32>
    %cst_13 = arith.constant dense<0.000000e+00> : vector<8xf32>
    %22 = vector.multi_reduction <add>, %21, %cst_13 [1] : vector<8x128xf32> to vector<8xf32>
    %23 = vector.shape_cast %22 : vector<8xf32> to vector<8x1xf32>
    %cst_14 = arith.constant 1.280000e+02 : f32
    %24 = vector.broadcast %cst_14 : f32 to vector<8x1xf32>
    %25 = arith.divf %23, %24 : vector<8x1xf32>
    %26 = vector.broadcast %25 : vector<8x1xf32> to vector<8x128xf32>
    %27 = arith.subf %21, %26 : vector<8x128xf32>
    %28 = arith.mulf %27, %27 : vector<8x128xf32>
    %cst_15 = arith.constant dense<0.000000e+00> : vector<8xf32>
    %29 = vector.multi_reduction <add>, %28, %cst_15 [1] : vector<8x128xf32> to vector<8xf32>
    %30 = vector.shape_cast %29 : vector<8xf32> to vector<8x1xf32>
    %cst_16 = arith.constant 1.280000e+02 : f32
    %31 = vector.broadcast %cst_16 : f32 to vector<8x1xf32>
    %32 = arith.divf %30, %31 : vector<8x1xf32>
    %cst_17 = arith.constant 9.99999974E-6 : f32
    %33 = vector.broadcast %cst_17 : f32 to vector<8x1xf32>
    %34 = arith.addf %32, %33 : vector<8x1xf32>
    %35 = math.rsqrt %34 : vector<8x1xf32>
    %36 = vector.broadcast %35 : vector<8x1xf32> to vector<8x128xf32>
    %37 = arith.mulf %27, %36 : vector<8x128xf32>
    %38 = vector.broadcast %2 : vector<1x128xf32> to vector<8x128xf32>
    %39 = arith.mulf %37, %38 : vector<8x128xf32>
    %40 = vector.broadcast %3 : vector<1x128xf32> to vector<8x128xf32>
    %41 = arith.addf %39, %40 : vector<8x128xf32>
    %c0_18 = arith.constant 0 : index
    %c0_19 = arith.constant 0 : index
    %42 = vector.load %arg5[%c0_18, %c0_19] : memref<8x128xf32, #tpu.memory_space<vmem>>, vector<8x128xf32>
    tpu.vector_store %arg5[%c0_18, %c0_19], %41 {strides = array<i32>} : memref<8x128xf32, #tpu.memory_space<vmem>>, vector<8x128xf32>,
    return
  }
  func.func @transform_0(%arg0: i32) -> (i32, i32) {
    %c0_i32 = arith.constant 0 : i32
    %c0_i32_0 = arith.constant 0 : i32
    return %arg0, %c0_i32 : i32, i32
  }
  func.func @transform_1(%arg0: i32) -> (i32, i32) {
    %c0_i32 = arith.constant 0 : i32
    %c0_i32_0 = arith.constant 0 : i32
    %c0_i32_1 = arith.constant 0 : i32
    return %c0_i32, %c0_i32_0 : i32, i32
  }
  func.func @transform_2(%arg0: i32) -> (i32, i32) {
    %c0_i32 = arith.constant 0 : i32
    %c0_i32_0 = arith.constant 0 : i32
    %c0_i32_1 = arith.constant 0 : i32
    return %c0_i32, %c0_i32_0 : i32, i32
  }
  func.func @transform_3(%arg0: i32) -> (i32, i32) {
    %c0_i32 = arith.constant 0 : i32
    %c0_i32_0 = arith.constant 0 : i32
    %c0_i32_1 = arith.constant 0 : i32
    return %c0_i32, %c0_i32_0 : i32, i32
  }
  func.func @transform_4(%arg0: i32) -> (i32, i32) {
    %c0_i32 = arith.constant 0 : i32
    %c0_i32_0 = arith.constant 0 : i32
    return %arg0, %c0_i32 : i32, i32
  }
}

module attributes {stable_mosaic.version = 11 : i64} {
  func.func @_clve_head_kernel(%arg0: i32, %arg1: memref<8x64xf32, #tpu.memory_space<vmem>>, %arg2: memref<64x128xf32, #tpu.memory_space<vmem>>, %arg3: memref<128x128xf32, #tpu.memory_space<vmem>>, %arg4: memref<4x128xf32, #tpu.memory_space<vmem>>, %arg5: memref<8x128xf32, #tpu.memory_space<vmem>>) attributes {dimension_semantics = [#tpu.dimension_semantics<parallel>], iteration_bounds = array<i64: 1>, scalar_prefetch = 0 : i64, scratch_operands = 0 : i64, tpu.core_type = #tpu.core_type<tc>, window_params = [{transform_indices = @transform_0, window_bounds = array<i64: 8, 64>}, {pipeline_mode = #tpu.pipeline_mode<synchronous>, transform_indices = @transform_1, window_bounds = array<i64: 64, 128>}, {pipeline_mode = #tpu.pipeline_mode<synchronous>, transform_indices = @transform_2, window_bounds = array<i64: 128, 128>}, {pipeline_mode = #tpu.pipeline_mode<synchronous>, transform_indices = @transform_3, window_bounds = array<i64: 4, 128>}, {transform_indices = @transform_4, window_bounds = array<i64: 8, 128>}]} {
    %c0 = arith.constant 0 : index
    %c0_0 = arith.constant 0 : index
    %0 = vector.load %arg4[%c0, %c0_0] : memref<4x128xf32, #tpu.memory_space<vmem>>, vector<1x128xf32>
    %c1 = arith.constant 1 : index
    %c0_1 = arith.constant 0 : index
    %1 = vector.load %arg4[%c1, %c0_1] : memref<4x128xf32, #tpu.memory_space<vmem>>, vector<1x128xf32>
    %c2 = arith.constant 2 : index
    %c0_2 = arith.constant 0 : index
    %2 = vector.load %arg4[%c2, %c0_2] : memref<4x128xf32, #tpu.memory_space<vmem>>, vector<1x128xf32>
    %c3 = arith.constant 3 : index
    %c0_3 = arith.constant 0 : index
    %3 = vector.load %arg4[%c3, %c0_3] : memref<4x128xf32, #tpu.memory_space<vmem>>, vector<1x128xf32>
    %c0_4 = arith.constant 0 : index
    %c0_5 = arith.constant 0 : index
    %4 = vector.load %arg1[%c0_4, %c0_5] : memref<8x64xf32, #tpu.memory_space<vmem>>, vector<8x64xf32>
    %c0_6 = arith.constant 0 : index
    %c0_7 = arith.constant 0 : index
    %5 = vector.load %arg2[%c0_6, %c0_7] : memref<64x128xf32, #tpu.memory_space<vmem>>, vector<64x128xf32>
    %cst = arith.constant dense<0.000000e+00> : vector<8x128xf32>
    %6 = tpu.matmul %4, %5, %cst {dimension_numbers = #tpu.dot_dimension_numbers<[1], [0], [0], [1], [0, 0, 1, 1], [], []>} : vector<8x64xf32>, vector<64x128xf32>, vector<8x128xf32> -> vector<8x128xf32>
    %7 = vector.broadcast %0 : vector<1x128xf32> to vector<8x128xf32>
    %8 = arith.addf %6, %7 : vector<8x128xf32>
    %cst_8 = arith.constant 1.702000e+00 : f32
    %9 = vector.broadcast %cst_8 : f32 to vector<8x128xf32>
    %10 = arith.mulf %9, %8 : vector<8x128xf32>
    %11 = arith.negf %10 : vector<8x128xf32>
    %12 = math.exp %11 : vector<8x128xf32>
    %cst_9 = arith.constant 1.000000e+00 : f32
    %13 = vector.broadcast %cst_9 : f32 to vector<8x128xf32>
    %14 = arith.addf %13, %12 : vector<8x128xf32>
    %15 = arith.divf %13, %14 : vector<8x128xf32>
    %16 = arith.mulf %8, %15 : vector<8x128xf32>
    %c0_10 = arith.constant 0 : index
    %c0_11 = arith.constant 0 : index
    %17 = vector.load %arg3[%c0_10, %c0_11] : memref<128x128xf32, #tpu.memory_space<vmem>>, vector<128x128xf32>
    %cst_12 = arith.constant dense<0.000000e+00> : vector<8x128xf32>
    %18 = tpu.matmul %16, %17, %cst_12 {dimension_numbers = #tpu.dot_dimension_numbers<[1], [0], [0], [1], [0, 0, 1, 1], [], []>} : vector<8x128xf32>, vector<128x128xf32>, vector<8x128xf32> -> vector<8x128xf32>
    %19 = vector.broadcast %1 : vector<1x128xf32> to vector<8x128xf32>
    %20 = arith.addf %18, %19 : vector<8x128xf32>
    %21 = arith.addf %20, %8 : vector<8x128xf32>
    %cst_13 = arith.constant dense<0.000000e+00> : vector<8xf32>
    %22 = vector.multi_reduction <add>, %21, %cst_13 [1] : vector<8x128xf32> to vector<8xf32>
    %23 = vector.shape_cast %22 : vector<8xf32> to vector<8x1xf32>
    %cst_14 = arith.constant 1.280000e+02 : f32
    %24 = vector.broadcast %cst_14 : f32 to vector<8x1xf32>
    %25 = arith.divf %23, %24 : vector<8x1xf32>
    %26 = vector.broadcast %25 : vector<8x1xf32> to vector<8x128xf32>
    %27 = arith.subf %21, %26 : vector<8x128xf32>
    %28 = arith.mulf %27, %27 : vector<8x128xf32>
    %cst_15 = arith.constant dense<0.000000e+00> : vector<8xf32>
    %29 = vector.multi_reduction <add>, %28, %cst_15 [1] : vector<8x128xf32> to vector<8xf32>
    %30 = vector.shape_cast %29 : vector<8xf32> to vector<8x1xf32>
    %cst_16 = arith.constant 1.280000e+02 : f32
    %31 = vector.broadcast %cst_16 : f32 to vector<8x1xf32>
    %32 = arith.divf %30, %31 : vector<8x1xf32>
    %cst_17 = arith.constant 9.99999974E-6 : f32
    %33 = vector.broadcast %cst_17 : f32 to vector<8x1xf32>
    %34 = arith.addf %32, %33 : vector<8x1xf32>
    %35 = math.rsqrt %34 : vector<8x1xf32>
    %36 = vector.broadcast %35 : vector<8x1xf32> to vector<8x128xf32>
    %37 = arith.mulf %27, %36 : vector<8x128xf32>
    %38 = vector.broadcast %2 : vector<1x128xf32> to vector<8x128xf32>
    %39 = arith.mulf %37, %38 : vector<8x128xf32>
    %40 = vector.broadcast %3 : vector<1x128xf32> to vector<8x128xf32>
    %41 = arith.addf %39, %40 : vector<8x128xf32>
    %c0_18 = arith.constant 0 : index
    %c0_19 = arith.constant 0 : index
    %42 = vector.load %arg5[%c0_18, %c0_19] : memref<8x128xf32, #tpu.memory_space<vmem>>, vector<8x128xf32>
    tpu.vector_store %arg5[%c0_18, %c0_19], %41 {strides = array<i32>} : memref<8x128xf32, #tpu.memory_space<vmem>>, vector<8x128xf32>,
    return
  }
  func.func @transform_0(%arg0: i32) -> (i32, i32) {
    %c0_i32 = arith.constant 0 : i32
    %c0_i32_0 = arith.constant 0 : i32
    return %arg0, %c0_i32 : i32, i32
  }
  func.func @transform_1(%arg0: i32) -> (i32, i32) {
    %c0_i32 = arith.constant 0 : i32
    %c0_i32_0 = arith.constant 0 : i32
    %c0_i32_1 = arith.constant 0 : i32
    return %c0_i32, %c0_i32_0 : i32, i32
  }
  func.func @transform_2(%arg0: i32) -> (i32, i32) {
    %c0_i32 = arith.constant 0 : i32
    %c0_i32_0 = arith.constant 0 : i32
    %c0_i32_1 = arith.constant 0 : i32
    return %c0_i32, %c0_i32_0 : i32, i32
  }
  func.func @transform_3(%arg0: i32) -> (i32, i32) {
    %c0_i32 = arith.constant 0 : i32
    %c0_i32_0 = arith.constant 0 : i32
    %c0_i32_1 = arith.constant 0 : i32
    return %c0_i32, %c0_i32_0 : i32, i32
  }
  func.func @transform_4(%arg0: i32) -> (i32, i32) {
    %c0_i32 = arith.constant 0 : i32
    %c0_i32_0 = arith.constant 0 : i32
    return %arg0, %c0_i32 : i32, i32
  }
}

</mosaic_0001>

<bundles_post_ra>
// kernel: tpu_custom_call.1
= control target key start
LH: loop header
LB: loop body
LE: loop exit
PB: predicated region body
PF: predicated region fallthrough
CT: control target
= control target key end

     0   :  { %9 = vsyncpa [#allocation3], 0  ;;  %s423_s0 = inlined_call_operand.hbm [shape: f32[8,64], index: 0, kind: input, shape index: {}]   ;;  %s424_s1 = inlined_call_operand.hbm [shape: f32[64,128], index: 1, kind: input, shape index: {}]   ;;  %s425_s2 = inlined_call_operand.hbm [shape: f32[128,128], index: 2, kind: input, shape index: {}]   ;;  %s426_s3 = inlined_call_operand.hbm [shape: f32[4,128], index: 3, kind: input, shape index: {}]   ;;  %s427_s4 = inlined_call_operand.hbm [shape: f32[8,128], index: 4, kind: output, shape index: {}]  }
   0x1   :  { %10 = vsyncpa [#allocation6], 0 }
   0x2   :  { %11 = vsyncpa [#allocation9], 0  ;;  %s28_s17 = sshll.u32 %s424_s1, 4  ;;  %s29_s17 = int_to_ptr.hbm [resolvable:$true] %s28_s17 }
   0x3   :  { %12 = vsyncpa [#allocation4], 0  ;;  %s375_s18 = smov [#allocation5]   ;;  %s18_s22 = sshll.u32 %s423_s0, 4  ;;  %s19_s22 = int_to_ptr.hbm [resolvable:$true] %s18_s22 }
   0x4   :  { %s30_s19 = sshll.u32 %s375_s18, 4  ;;  %s376_s23 = smov 128   ;;  %s31_s19 = int_to_ptr.vmem [resolvable:$true] %s30_s19 }
   0x5   :  { %s377_s24 = smov 8   ;;  %s378_s25 = smov [#allocation2]  }
   0x6   :  { %36 = dma.hbm_to_vmem [thread:$0]  %s29_s17, 1024, %s31_s19, [#allocation6], %s376_s23, %s376_s23, %s377_s24  }
   0x7   :  { %s20_s26 = sshll.u32 %s378_s25, 4  ;;  %s41_s29 = sshll.u32 %s425_s2, 4  ;;  %s21_s26 = int_to_ptr.vmem [resolvable:$true] %s20_s26  ;;  %s42_s29 = int_to_ptr.hbm [resolvable:$true] %s41_s29 }
   0x8   :  { %23 = dma.hbm_to_vmem [thread:$0]  %s19_s22, 128, %s21_s26, [#allocation3]  }
   0x9   :  { %s55_s5 = sshll.u32 %s426_s3, 4  ;;  %s379_s6 = smov [#allocation7]   ;;  %s56_s5 = int_to_ptr.hbm [resolvable:$true] %s55_s5 }
   0xa   :  { %s43_s7 = sshll.u32 %s379_s6, 4  ;;  %s380_s0 = smov [#allocation8]   ;;  %s44_s7 = int_to_ptr.vmem [resolvable:$true] %s43_s7 }
   0xb   :  { %49 = dma.hbm_to_vmem [thread:$0]  %s42_s29, 2048, %s44_s7, [#allocation6], %s376_s23, %s376_s23, %s377_s24  }
   0xc   :  { %s57_s8 = sshll.u32 %s380_s0, 4  ;;  %s58_s8 = int_to_ptr.vmem [resolvable:$true] %s57_s8 }
   0xd   :  { %60 = dma.hbm_to_vmem [thread:$0]  %s56_s5, 64, %s58_s8, [#allocation9]  }
   0xe   :  { %367 = dma.done.wait [#allocation3], 128  }
   0xf   :  { %368 = vsyncadd [#allocation3], 4294967168 }
  0x10   :  { %369 = dma.done.wait [#allocation6], 3072  }
  0x11   :  { %370 = vsyncadd [#allocation6], 4294964224 }
  0x12   :  { %371 = dma.done.wait [#allocation9], 64  }
  0x13   :  { %372 = vsyncadd [#allocation9], 4294967232  ;;  %v89_v0 = vld [vmem:[#allocation5 + $0x38] sm:$0xff]  ;;  %v88_v1 = vld [vmem:[#allocation5 + $0x30] sm:$0xff]  ;;  %vm91_vm0 = vcmask 523264   ;;  %v381_v47 = vmov 128.0  }
  0x14   :  { %103 = vmatpush.msra.mxu0 %v89_v0  ;;  %v87_v2 = vld [vmem:[#allocation5 + $0x28] sm:$0xff]  ;;  %v86_v3 = vld [vmem:[#allocation5 + $0x20] sm:$0xff]  ;;  %v85_v4 = vld [vmem:[#allocation5 + $0x18] sm:$0xff]  ;;  %s382_s2 = smov [#allocation10]   ;;  %s213_s11 = sshll.u32 %s427_s4, 4  ;;  %s214_s11 = int_to_ptr.hbm [resolvable:$true] %s213_s11 }
  0x15   :  { %v84_v5 = vld [vmem:[#allocation5 + $0x10] sm:$0xff]  ;;  %v83_v6 = vld [vmem:[#allocation5 + $0x8] sm:$0xff]  ;;  %v82_v7 = vld [vmem:[#allocation5] sm:$0xff]  ;;  %s211_s3 = sshll.u32 %s382_s2, 4  ;;  %s212_s3 = int_to_ptr.vmem [resolvable:$true] %s211_s3 }
  0x16   :  { %104 = vmatpush.msra.mxu0 %v88_v1  ;;  %v81_v8 = vld [vmem:[#allocation2] sm:$0xff]  ;;  %v150_v10 = vld [vmem:[#allocation7 + $0x70] sm:$0xff]  ;;  %v149_v11 = vld [vmem:[#allocation7 + $0x68] sm:$0xff] }
  0x17   :  { %v151_v9 = vld [vmem:[#allocation7 + $0x78] sm:$0xff]  ;;  %v148_v12 = vld [vmem:[#allocation7 + $0x60] sm:$0xff]  ;;  %v146_v14 = vld [vmem:[#allocation7 + $0x50] sm:$0xff] }
  0x18   :  { %105 = vmatpush.msra.mxu0 %v87_v2  ;;  %153 = vmatpush.msra.mxu1 %v151_v9  ;;  %v147_v13 = vld [vmem:[#allocation7 + $0x58] sm:$0xff]  ;;  %v145_v15 = vld [vmem:[#allocation7 + $0x48] sm:$0xff]  ;;  %v144_v16 = vld [vmem:[#allocation7 + $0x40] sm:$0xff] }
  0x19   :  { %v143_v17 = vld [vmem:[#allocation7 + $0x38] sm:$0xff]  ;;  %v142_v18 = vld [vmem:[#allocation7 + $0x30] sm:$0xff]  ;;  %v141_v19 = vld [vmem:[#allocation7 + $0x28] sm:$0xff] }
  0x1a   :  { %106 = vmatpush.msra.mxu0 %v86_v3  ;;  %154 = vmatpush.msra.mxu1 %v150_v10  ;;  %v140_v20 = vld [vmem:[#allocation7 + $0x20] sm:$0xff]  ;;  %v139_v21 = vld [vmem:[#allocation7 + $0x18] sm:$0xff]  ;;  %v138_v22 = vld [vmem:[#allocation7 + $0x10] sm:$0xff] }
  0x1b   :  { %v235_v23 = vld [vmem:[#allocation8] ss:$0 sm:$0xff]  ;;  %v137_v24 = vld [vmem:[#allocation7 + $0x8] sm:$0xff]  ;;  %v236_v43 = vld [vmem:[#allocation8 + $0x1] ss:$0 sm:$0xff] }
  0x1c   :  { %107 = vmatpush.msra.mxu0 %v85_v4  ;;  %155 = vmatpush.msra.mxu1 %v149_v11  ;;  %v136_v25 = vld [vmem:[#allocation7] sm:$0xff] }
  0x1d   :  { %v237_v3 = vld [vmem:[#allocation8 + $0x2] ss:$0 sm:$0xff] }
  0x1e   :  { %108 = vmatpush.msra.mxu0 %v84_v5  ;;  %156 = vmatpush.msra.mxu1 %v148_v12 }
  0x20   :  { %109 = vmatpush.msra.mxu0 %v83_v6  ;;  %157 = vmatpush.msra.mxu1 %v147_v13  ;;  %v238_v6 = vld [vmem:[#allocation8 + $0x3] ss:$0 sm:$0xff] }
  0x22   :  { %110 = vmatpush.msra.mxu0 %v82_v7  ;;  %158 = vmatpush.msra.mxu1 %v146_v14 }
  0x23   :  { %225 = vmatmul.msk.f32.vlgmr.msra.gmra.mxu0 %vm91_vm0, %v81_v8 }
  0x24   :  { %159 = vmatpush.msra.mxu1 %v145_v15 }
  0x26   :  { %160 = vmatpush.msra.mxu1 %v144_v16 }
  0x28   :  { %161 = vmatpush.msra.mxu1 %v143_v17 }
  0x2a   :  { %162 = vmatpush.msra.mxu1 %v142_v18 }
  0x2c   :  { %163 = vmatpush.msra.mxu1 %v141_v19 }
  0x2e   :  { %164 = vmatpush.msra.mxu1 %v140_v20 }
  0x30   :  { %165 = vmatpush.msra.mxu1 %v139_v21 }
  0x32   :  { %166 = vmatpush.msra.mxu1 %v138_v22 }
  0x34   :  { %167 = vmatpush.msra.mxu1 %v137_v24 }
  0x36   :  { %168 = vmatpush.msra.mxu1 %v136_v25 }
  0xa0   :  { %v112_v26 = vpop.f32.mrf.mxu0 }
  0xa1   :  { %v113_v27 = vadd.f32 %v235_v23, %v112_v26 }
  0xa3   :  { %v226_v28 = vmul.f32 -1.702, %v113_v27 }
  0xa5   :  { %v117_v29 = vmul.f32 1.442695, %v226_v28 }
  0xa7   :  { %239 = vpow2.f32 %v117_v29 }
  0xad   :  { %v240_v30 = vpop.eup %239 }
  0xae   :  { %v119_v31 = vadd.f32 1.0, %v240_v30 }
  0xb0   :  { %241 = vrcp.f32 %v119_v31  ;;  %v131_v35 = vand.u32 2147483648, %v119_v31  ;;  %v129_v37 = vand.u32 2147483647, %v119_v31  ;;  %vm125_vm2 = vweird.f32 %v119_v31 }
  0xb1   :  { %243 = vrcp.f32 %v381_v47 }
  0xb2   :  { %v132_v39 = vor.u32 1.1754944e-38, %v131_v35  ;;  %vm130_vm4 = vcmp.eq.f32.partialorder %v129_v37, 8.507059e+37 }
  0xb6   :  { %v242_v32 = vpop.eup %241 }
  0xb7   :  { %v121_v33 = vmul.f32 %v242_v32, %v119_v31  ;;  %vm126_vm1 = vweird.f32 %v242_v32  ;;  %v244_v48 = vpop.eup %243 }
  0xb8   :  { %vm127_vm3 = vmor %vm125_vm2, %vm126_vm1  ;;  %v177_v49 = vmul.f32 128.0, %v244_v48  ;;  %vm181_vm5 = vweird.f32 %v244_v48 }
  0xb9   :  { %v122_v34 = vsub.f32 1.0, %v121_v33 }
  0xba   :  { %v178_v50 = vsub.f32 1.0, %v177_v49 }
  0xbb   :  { %v123_v36 = vmul.f32 %v242_v32, %v122_v34 }
  0xbc   :  { %v179_v51 = vmul.f32 %v244_v48, %v178_v50 }
  0xbd   :  { %v124_v38 = vadd.f32 %v242_v32, %v123_v36 }
  0xbe   :  { %v180_v52 = vadd.f32 %v244_v48, %v179_v51 }
  0xbf   :  { %v128_v40 = vsel %vm127_vm3, %v242_v32, %v124_v38 }
  0xc0   :  { %v133_v41 = vsel %vm130_vm4, %v132_v39, %v128_v40  ;;  %v182_v53 = vsel %vm181_vm5, %v244_v48, %v180_v52 }
  0xc1   :  { %v135_v42 = vmul.f32 %v133_v41, %v113_v27 }
  0xc3   :  { %169 = vmatmul.f32.vlgmr.msra.gmra.mxu1 %v135_v42 }
 0x140   :  { %v170_v44 = vpop.f32.mrf.mxu1 }
 0x141   :  { %v171_v45 = vadd.f32 %v236_v43, %v170_v44 }
 0x143   :  { %v173_v46 = vadd.f32 %v171_v45, %v113_v27 }
 0x145   :  { %174 = vadd.xlane.f32.xlu0 %v173_v46 }
 0x1b8   :  { %v175_v54 = vpop.xlane.xlu0 %174 }
 0x1b9   :  { %v183_v55 = vmul.f32 %v182_v53, %v175_v54 }
 0x1bb   :  { %v184_v56 = vsub.f32 %v173_v46, %v183_v55 }
 0x1bd   :  { %v185_v57 = vmul.f32 %v184_v56, %v184_v56 }
 0x1bf   :  { %186 = vadd.xlane.f32.xlu0 %v185_v57 }
 0x232   :  { %v187_v58 = vpop.xlane.xlu0 %186 }
 0x233   :  { %v188_v59 = vmul.f32 %v187_v58, %v182_v53 }
 0x235   :  { %v189_v60 = vadd.f32 1e-05, %v188_v59 }
 0x237   :  { %245 = vrsqrt.f32 %v189_v60  ;;  %vm196_vm7 = vweird.f32 %v189_v60 }
 0x23d   :  { %v246_v61 = vpop.eup %245 }
 0x23e   :  { %v191_v62 = vmul.f32 %v246_v61, %v189_v60  ;;  %vm197_vm6 = vweird.f32 %v246_v61 }
 0x23f   :  { %vm198_vm8 = vmor %vm196_vm7, %vm197_vm6 }
 0x240   :  { %v192_v63 = vmul.f32 %v246_v61, %v191_v62 }
 0x242   :  { %v193_v0 = vmul.f32 0.5, %v192_v63 }
 0x244   :  { %v194_v1 = vsub.f32 1.5, %v193_v0 }
 0x246   :  { %v195_v2 = vmul.f32 %v246_v61, %v194_v1 }
 0x248   :  { %v199_v4 = vsel %vm198_vm8, %v246_v61, %v195_v2 }
 0x249   :  { %v200_v5 = vmul.f32 %v199_v4, %v184_v56 }
 0x24b   :  { %v202_v7 = vmul.f32 %v237_v3, %v200_v5 }
 0x24d   :  { %v204_v8 = vadd.f32 %v238_v6, %v202_v7 }
 0x24f   :  { %205 = vst [vmem:[#allocation10] sm:$0xff] %v204_v8 }
 0x250   :  { %216 = dma.vmem_to_hbm [thread:$0]  %s212_s3, 128, %s214_s11, [#allocation4]  }
 0x251   :  { %373 = dma.done.wait [#allocation4], 128  }
 0x252   :  { %374 = vsyncadd [#allocation4], 4294967168 }
 0x253   :  { %221 = vsyncpa [#allocation3], 1 }
 0x254   :  { %222 = vsyncpa [#allocation6], 1 }
 0x255   :  { %223 = vsyncpa [#allocation9], 1 }
 0x256   :  { %224 = vsyncpa [#allocation4], 1 }

// kernel: tpu_custom_call.1
= control target key start
LH: loop header
LB: loop body
LE: loop exit
PB: predicated region body
PF: predicated region fallthrough
CT: control target
= control target key end

     0   :  { %9 = vsyncpa [#allocation3], 0  ;;  %s423_s0 = inlined_call_operand.hbm [shape: f32[8,64], index: 0, kind: input, shape index: {}]   ;;  %s424_s1 = inlined_call_operand.hbm [shape: f32[64,128], index: 1, kind: input, shape index: {}]   ;;  %s425_s2 = inlined_call_operand.hbm [shape: f32[128,128], index: 2, kind: input, shape index: {}]   ;;  %s426_s3 = inlined_call_operand.hbm [shape: f32[4,128], index: 3, kind: input, shape index: {}]   ;;  %s427_s4 = inlined_call_operand.hbm [shape: f32[8,128], index: 4, kind: output, shape index: {}]  }
   0x1   :  { %10 = vsyncpa [#allocation6], 0 }
   0x2   :  { %11 = vsyncpa [#allocation9], 0  ;;  %s28_s17 = sshll.u32 %s424_s1, 4  ;;  %s29_s17 = int_to_ptr.hbm [resolvable:$true] %s28_s17 }
   0x3   :  { %12 = vsyncpa [#allocation4], 0  ;;  %s375_s18 = smov [#allocation5]   ;;  %s18_s22 = sshll.u32 %s423_s0, 4  ;;  %s19_s22 = int_to_ptr.hbm [resolvable:$true] %s18_s22 }
   0x4   :  { %s30_s19 = sshll.u32 %s375_s18, 4  ;;  %s376_s23 = smov 128   ;;  %s31_s19 = int_to_ptr.vmem [resolvable:$true] %s30_s19 }
   0x5   :  { %s377_s24 = smov 8   ;;  %s378_s25 = smov [#allocation2]  }
   0x6   :  { %36 = dma.hbm_to_vmem [thread:$0]  %s29_s17, 1024, %s31_s19, [#allocation6], %s376_s23, %s376_s23, %s377_s24  }
   0x7   :  { %s20_s26 = sshll.u32 %s378_s25, 4  ;;  %s41_s29 = sshll.u32 %s425_s2, 4  ;;  %s21_s26 = int_to_ptr.vmem [resolvable:$true] %s20_s26  ;;  %s42_s29 = int_to_ptr.hbm [resolvable:$true] %s41_s29 }
   0x8   :  { %23 = dma.hbm_to_vmem [thread:$0]  %s19_s22, 128, %s21_s26, [#allocation3]  }
   0x9   :  { %s55_s5 = sshll.u32 %s426_s3, 4  ;;  %s379_s6 = smov [#allocation7]   ;;  %s56_s5 = int_to_ptr.hbm [resolvable:$true] %s55_s5 }
   0xa   :  { %s43_s7 = sshll.u32 %s379_s6, 4  ;;  %s380_s0 = smov [#allocation8]   ;;  %s44_s7 = int_to_ptr.vmem [resolvable:$true] %s43_s7 }
   0xb   :  { %49 = dma.hbm_to_vmem [thread:$0]  %s42_s29, 2048, %s44_s7, [#allocation6], %s376_s23, %s376_s23, %s377_s24  }
   0xc   :  { %s57_s8 = sshll.u32 %s380_s0, 4  ;;  %s58_s8 = int_to_ptr.vmem [resolvable:$true] %s57_s8 }
   0xd   :  { %60 = dma.hbm_to_vmem [thread:$0]  %s56_s5, 64, %s58_s8, [#allocation9]  }
   0xe   :  { %367 = dma.done.wait [#allocation3], 128  }
   0xf   :  { %368 = vsyncadd [#allocation3], 4294967168 }
  0x10   :  { %369 = dma.done.wait [#allocation6], 3072  }
  0x11   :  { %370 = vsyncadd [#allocation6], 4294964224 }
  0x12   :  { %371 = dma.done.wait [#allocation9], 64  }
  0x13   :  { %372 = vsyncadd [#allocation9], 4294967232  ;;  %v89_v0 = vld [vmem:[#allocation5 + $0x38] sm:$0xff]  ;;  %v88_v1 = vld [vmem:[#allocation5 + $0x30] sm:$0xff]  ;;  %vm91_vm0 = vcmask 523264   ;;  %v381_v47 = vmov 128.0  }
  0x14   :  { %103 = vmatpush.msra.mxu0 %v89_v0  ;;  %v87_v2 = vld [vmem:[#allocation5 + $0x28] sm:$0xff]  ;;  %v86_v3 = vld [vmem:[#allocation5 + $0x20] sm:$0xff]  ;;  %v85_v4 = vld [vmem:[#allocation5 + $0x18] sm:$0xff]  ;;  %s382_s2 = smov [#allocation10]   ;;  %s213_s11 = sshll.u32 %s427_s4, 4  ;;  %s214_s11 = int_to_ptr.hbm [resolvable:$true] %s213_s11 }
  0x15   :  { %v84_v5 = vld [vmem:[#allocation5 + $0x10] sm:$0xff]  ;;  %v83_v6 = vld [vmem:[#allocation5 + $0x8] sm:$0xff]  ;;  %v82_v7 = vld [vmem:[#allocation5] sm:$0xff]  ;;  %s211_s3 = sshll.u32 %s382_s2, 4  ;;  %s212_s3 = int_to_ptr.vmem [resolvable:$true] %s211_s3 }
  0x16   :  { %104 = vmatpush.msra.mxu0 %v88_v1  ;;  %v81_v8 = vld [vmem:[#allocation2] sm:$0xff]  ;;  %v150_v10 = vld [vmem:[#allocation7 + $0x70] sm:$0xff]  ;;  %v149_v11 = vld [vmem:[#allocation7 + $0x68] sm:$0xff] }
  0x17   :  { %v151_v9 = vld [vmem:[#allocation7 + $0x78] sm:$0xff]  ;;  %v148_v12 = vld [vmem:[#allocation7 + $0x60] sm:$0xff]  ;;  %v146_v14 = vld [vmem:[#allocation7 + $0x50] sm:$0xff] }
  0x18   :  { %105 = vmatpush.msra.mxu0 %v87_v2  ;;  %153 = vmatpush.msra.mxu1 %v151_v9  ;;  %v147_v13 = vld [vmem:[#allocation7 + $0x58] sm:$0xff]  ;;  %v145_v15 = vld [vmem:[#allocation7 + $0x48] sm:$0xff]  ;;  %v144_v16 = vld [vmem:[#allocation7 + $0x40] sm:$0xff] }
  0x19   :  { %v143_v17 = vld [vmem:[#allocation7 + $0x38] sm:$0xff]  ;;  %v142_v18 = vld [vmem:[#allocation7 + $0x30] sm:$0xff]  ;;  %v141_v19 = vld [vmem:[#allocation7 + $0x28] sm:$0xff] }
  0x1a   :  { %106 = vmatpush.msra.mxu0 %v86_v3  ;;  %154 = vmatpush.msra.mxu1 %v150_v10  ;;  %v140_v20 = vld [vmem:[#allocation7 + $0x20] sm:$0xff]  ;;  %v139_v21 = vld [vmem:[#allocation7 + $0x18] sm:$0xff]  ;;  %v138_v22 = vld [vmem:[#allocation7 + $0x10] sm:$0xff] }
  0x1b   :  { %v235_v23 = vld [vmem:[#allocation8] ss:$0 sm:$0xff]  ;;  %v137_v24 = vld [vmem:[#allocation7 + $0x8] sm:$0xff]  ;;  %v236_v43 = vld [vmem:[#allocation8 + $0x1] ss:$0 sm:$0xff] }
  0x1c   :  { %107 = vmatpush.msra.mxu0 %v85_v4  ;;  %155 = vmatpush.msra.mxu1 %v149_v11  ;;  %v136_v25 = vld [vmem:[#allocation7] sm:$0xff] }
  0x1d   :  { %v237_v3 = vld [vmem:[#allocation8 + $0x2] ss:$0 sm:$0xff] }
  0x1e   :  { %108 = vmatpush.msra.mxu0 %v84_v5  ;;  %156 = vmatpush.msra.mxu1 %v148_v12 }
  0x20   :  { %109 = vmatpush.msra.mxu0 %v83_v6  ;;  %157 = vmatpush.msra.mxu1 %v147_v13  ;;  %v238_v6 = vld [vmem:[#allocation8 + $0x3] ss:$0 sm:$0xff] }
  0x22   :  { %110 = vmatpush.msra.mxu0 %v82_v7  ;;  %158 = vmatpush.msra.mxu1 %v146_v14 }
  0x23   :  { %225 = vmatmul.msk.f32.vlgmr.msra.gmra.mxu0 %vm91_vm0, %v81_v8 }
  0x24   :  { %159 = vmatpush.msra.mxu1 %v145_v15 }
  0x26   :  { %160 = vmatpush.msra.mxu1 %v144_v16 }
  0x28   :  { %161 = vmatpush.msra.mxu1 %v143_v17 }
  0x2a   :  { %162 = vmatpush.msra.mxu1 %v142_v18 }
  0x2c   :  { %163 = vmatpush.msra.mxu1 %v141_v19 }
  0x2e   :  { %164 = vmatpush.msra.mxu1 %v140_v20 }
  0x30   :  { %165 = vmatpush.msra.mxu1 %v139_v21 }
  0x32   :  { %166 = vmatpush.msra.mxu1 %v138_v22 }
  0x34   :  { %167 = vmatpush.msra.mxu1 %v137_v24 }
  0x36   :  { %168 = vmatpush.msra.mxu1 %v136_v25 }
  0xa0   :  { %v112_v26 = vpop.f32.mrf.mxu0 }
  0xa1   :  { %v113_v27 = vadd.f32 %v235_v23, %v112_v26 }
  0xa3   :  { %v226_v28 = vmul.f32 -1.702, %v113_v27 }
  0xa5   :  { %v117_v29 = vmul.f32 1.442695, %v226_v28 }
  0xa7   :  { %239 = vpow2.f32 %v117_v29 }
  0xad   :  { %v240_v30 = vpop.eup %239 }
  0xae   :  { %v119_v31 = vadd.f32 1.0, %v240_v30 }
  0xb0   :  { %241 = vrcp.f32 %v119_v31  ;;  %v131_v35 = vand.u32 2147483648, %v119_v31  ;;  %v129_v37 = vand.u32 2147483647, %v119_v31  ;;  %vm125_vm2 = vweird.f32 %v119_v31 }
  0xb1   :  { %243 = vrcp.f32 %v381_v47 }
  0xb2   :  { %v132_v39 = vor.u32 1.1754944e-38, %v131_v35  ;;  %vm130_vm4 = vcmp.eq.f32.partialorder %v129_v37, 8.507059e+37 }
  0xb6   :  { %v242_v32 = vpop.eup %241 }
  0xb7   :  { %v121_v33 = vmul.f32 %v242_v32, %v119_v31  ;;  %vm126_vm1 = vweird.f32 %v242_v32  ;;  %v244_v48 = vpop.eup %243 }
  0xb8   :  { %vm127_vm3 = vmor %vm125_vm2, %vm126_vm1  ;;  %v177_v49 = vmul.f32 128.0, %v244_v48  ;;  %vm181_vm5 = vweird.f32 %v244_v48 }
  0xb9   :  { %v122_v34 = vsub.f32 1.0, %v121_v33 }
  0xba   :  { %v178_v50 = vsub.f32 1.0, %v177_v49 }
  0xbb   :  { %v123_v36 = vmul.f32 %v242_v32, %v122_v34 }
  0xbc   :  { %v179_v51 = vmul.f32 %v244_v48, %v178_v50 }
  0xbd   :  { %v124_v38 = vadd.f32 %v242_v32, %v123_v36 }
  0xbe   :  { %v180_v52 = vadd.f32 %v244_v48, %v179_v51 }
  0xbf   :  { %v128_v40 = vsel %vm127_vm3, %v242_v32, %v124_v38 }
  0xc0   :  { %v133_v41 = vsel %vm130_vm4, %v132_v39, %v128_v40  ;;  %v182_v53 = vsel %vm181_vm5, %v244_v48, %v180_v52 }
  0xc1   :  { %v135_v42 = vmul.f32 %v133_v41, %v113_v27 }
  0xc3   :  { %169 = vmatmul.f32.vlgmr.msra.gmra.mxu1 %v135_v42 }
 0x140   :  { %v170_v44 = vpop.f32.mrf.mxu1 }
 0x141   :  { %v171_v45 = vadd.f32 %v236_v43, %v170_v44 }
 0x143   :  { %v173_v46 = vadd.f32 %v171_v45, %v113_v27 }
 0x145   :  { %174 = vadd.xlane.f32.xlu0 %v173_v46 }
 0x1b8   :  { %v175_v54 = vpop.xlane.xlu0 %174 }
 0x1b9   :  { %v183_v55 = vmul.f32 %v182_v53, %v175_v54 }
 0x1bb   :  { %v184_v56 = vsub.f32 %v173_v46, %v183_v55 }
 0x1bd   :  { %v185_v57 = vmul.f32 %v184_v56, %v184_v56 }
 0x1bf   :  { %186 = vadd.xlane.f32.xlu0 %v185_v57 }
 0x232   :  { %v187_v58 = vpop.xlane.xlu0 %186 }
 0x233   :  { %v188_v59 = vmul.f32 %v187_v58, %v182_v53 }
 0x235   :  { %v189_v60 = vadd.f32 1e-05, %v188_v59 }
 0x237   :  { %245 = vrsqrt.f32 %v189_v60  ;;  %vm196_vm7 = vweird.f32 %v189_v60 }
 0x23d   :  { %v246_v61 = vpop.eup %245 }
 0x23e   :  { %v191_v62 = vmul.f32 %v246_v61, %v189_v60  ;;  %vm197_vm6 = vweird.f32 %v246_v61 }
 0x23f   :  { %vm198_vm8 = vmor %vm196_vm7, %vm197_vm6 }
 0x240   :  { %v192_v63 = vmul.f32 %v246_v61, %v191_v62 }
 0x242   :  { %v193_v0 = vmul.f32 0.5, %v192_v63 }
 0x244   :  { %v194_v1 = vsub.f32 1.5, %v193_v0 }
 0x246   :  { %v195_v2 = vmul.f32 %v246_v61, %v194_v1 }
 0x248   :  { %v199_v4 = vsel %vm198_vm8, %v246_v61, %v195_v2 }
 0x249   :  { %v200_v5 = vmul.f32 %v199_v4, %v184_v56 }
 0x24b   :  { %v202_v7 = vmul.f32 %v237_v3, %v200_v5 }
 0x24d   :  { %v204_v8 = vadd.f32 %v238_v6, %v202_v7 }
 0x24f   :  { %205 = vst [vmem:[#allocation10] sm:$0xff] %v204_v8 }
 0x250   :  { %216 = dma.vmem_to_hbm [thread:$0]  %s212_s3, 128, %s214_s11, [#allocation4]  }
 0x251   :  { %373 = dma.done.wait [#allocation4], 128  }
 0x252   :  { %374 = vsyncadd [#allocation4], 4294967168 }
 0x253   :  { %221 = vsyncpa [#allocation3], 1 }
 0x254   :  { %222 = vsyncpa [#allocation6], 1 }
 0x255   :  { %223 = vsyncpa [#allocation9], 1 }
 0x256   :  { %224 = vsyncpa [#allocation4], 1 }

</bundles_post_ra>
